<compile_context>
chip_gen: v7x
topology: tpu7x:2x2x1
jax: 0.10.0
libtpu: 0.0.40
codegen_flags: <defaults>
</compile_context>

<pallas_src>
import functools

import numpy as np

import jax
import jax.numpy as jnp
from jax import lax
from jax.experimental import pallas as pl
from jax.experimental.pallas import tpu as pltpu

NCE_T = 0.07            # module hard-codes opt.nce_T = 0.07
NEG_MASK_VALUE = -10.0  # value written on the masked diagonal (before /T)

# Auto-tiling knobs.
_AUTO_FULL_S_BYTES = 4 << 20     # use full-width columns if the f32 similarity
                                 # tile (bb*rt*P*4 bytes) stays under this
_AUTO_STEP_S_ELEMS = 128 * 1024  # target similarity elements per grid step
                                 # (amortizes the fixed per-step overhead)


def _patch_nce_kernel(q_ref, k_ref, out_ref, *, col_chunk, n_full, tail,
                      bf16_matmul, bf16_exp, assume_normalized):
    """One grid step: bb batch items x rt query rows against all P keys."""
    bb, rt, D = q_ref.shape
    P = k_ref.shape[1]

    inv_t = jnp.float32(1.0 / NCE_T)
    masked_neg = jnp.float32(NEG_MASK_VALUE / NCE_T)   # masked diag, already /T
    mm_dtype = jnp.bfloat16 if bf16_matmul else jnp.float32

    # Fold 1/T into q once (bb*rt*D mults instead of bb*rt*P).
    q_f32 = q_ref[...].astype(jnp.float32) * inv_t          # (bb, rt, D)
    q_mm = q_f32.astype(mm_dtype)

    # Positive logit (q_i . k_i)/T in exact f32, reading only this step's rows.
    if rt == P:
        k_rows = k_ref[...]
    else:
        row0 = pl.multiple_of(pl.program_id(1) * rt, rt)
        k_rows = k_ref[:, pl.ds(row0, rt), :]
    pos = jnp.sum(q_f32 * k_rows.astype(jnp.float32), axis=-1, keepdims=True)

    def sim(k_vals):
        # (bb, rt, D) x (bb, C, D) -> (bb, rt, C) on the MXU, f32 accumulate.
        return jnp.einsum("brd,bcd->brc", q_mm, k_vals.astype(mm_dtype),
                          preferred_element_type=jnp.float32)

    def row_exp_sum(s, m):
        # sum_j exp(s_j - m) over the last axis, accumulated in f32.
        if bf16_exp:
            e = jnp.exp(s.astype(jnp.bfloat16) - m.astype(jnp.bfloat16))
            return jnp.sum(e.astype(jnp.float32), axis=-1, keepdims=True)
        return jnp.sum(jnp.exp(s - m), axis=-1, keepdims=True)

    full_cols = (n_full == 1 and tail == 0)       # cc == P: single matmul
    unroll = n_full if n_full <= 8 else 4

    if assume_normalized:
        # L2-normalized features: every logit <= 1/T, so use the static bound
        # instead of a running max (no per-chunk XLU reduce, no serial rescale).
        m = jnp.full_like(pos, inv_t)

        def acc(ssum, k_vals):
            return ssum + row_exp_sum(sim(k_vals), m)

        if full_cols:
            ssum = acc(jnp.zeros_like(pos), k_ref[...])
        else:
            def body(c, ssum):
                start = pl.multiple_of(c * col_chunk, col_chunk)
                return acc(ssum, k_ref[:, pl.ds(start, col_chunk), :])
            ssum = lax.fori_loop(0, n_full, body, jnp.zeros_like(pos),
                                 unroll=unroll)
            if tail:
                ssum = acc(ssum, k_ref[:, pl.ds(n_full * col_chunk, tail), :])
    else:
        # Flash-style online logsumexp over (unmasked) column chunks.
        def step(carry, k_vals):
            m, ssum = carry
            s_c = sim(k_vals)
            m_new = jnp.maximum(m, jnp.max(s_c, axis=-1, keepdims=True))
            ssum = ssum * jnp.exp(m - m_new) + row_exp_sum(s_c, m_new)
            return m_new, ssum

        carry0 = (pos, jnp.zeros_like(pos))        # seed max with pos (== diag)
        if full_cols:
            m, ssum = step(carry0, k_ref[...])
        else:
            def body(c, carry):
                start = pl.multiple_of(c * col_chunk, col_chunk)
                return step(carry, k_ref[:, pl.ds(start, col_chunk), :])
            m, ssum = lax.fori_loop(0, n_full, body, carry0, unroll=unroll)
            if tail:
                m, ssum = step((m, ssum),
                               k_ref[:, pl.ds(n_full * col_chunk, tail), :])

    # No diagonal masking was applied: diag(s) == pos, which is exactly the
    # positive term the reference concatenates, so the unmasked row sum is
    # already correct; just add the masked-diagonal slot exp(-10/T - m)
    # (underflows to 0 in f32, kept for exactness).
    ssum = ssum + jnp.exp(masked_neg - m)
    lse = m + jnp.log(ssum)                                   # (bb, rt, 1)
    out_ref[...] = jnp.sum(lse - pos).reshape(1, 1)           # partial CE sum


def patch_nce_loss(feat_q, feat_k, *, batch_size, col_chunk=None, row_tile=None,
                   batch_block=None, bf16_matmul=True, bf16_exp=False,
                   assume_normalized=False):
    """Pallas implementation of PatchNCELoss.forward (scalar mean CE loss).

    feat_q, feat_k: (N, D) with N = batch_size * npatches.
    """
    N, D = feat_q.shape
    if N % batch_size:
        raise ValueError("batch_size must divide the number of rows")
    P = N // batch_size
    B = batch_size

    # --- batch items per grid step (amortize fixed per-step overhead) -------
    if batch_block is None:
        target = max(1, _AUTO_STEP_S_ELEMS // max(P * P, 1))
        bb = 1
        for cand in range(min(B, target), 0, -1):
            if B % cand == 0:
                bb = cand
                break
    else:
        bb = batch_block
    if B % bb:
        raise ValueError("batch_block must divide batch_size")

    # --- row tiling: second parallel grid axis (keeps both v7x TCs busy) ----
    if row_tile is None:
        rt = P
        if P >= 1024 or (B // bb == 1 and P >= 256):
            for cand in (512, 256, 128):
                if P % cand == 0 and P // cand >= 2:
                    rt = cand
                    break
    else:
        rt = row_tile
    if P % rt or (rt != P and rt % 8):
        raise ValueError("row_tile must divide npatches and be a multiple of 8")

    # --- column chunk for the online logsumexp -------------------------------
    # 256 == MXU width on v6e/v7x and a lane multiple on v5e.  Arbitrary P is
    # handled via a static tail chunk -- never a full-(P,P) fallback.
    if col_chunk is None:
        cc = P if bb * rt * P * 4 <= _AUTO_FULL_S_BYTES else 256
    else:
        cc = col_chunk
    cc = min(cc, P)
    n_full = P // cc
    tail = P - n_full * cc

    # --- explicit VMEM budget (v7x has half the VMEM of v5e/v6e) ------------
    in_bytes = 4 * bb * D * (rt + P)                 # f32 q block + k block
    live_s = 4 * bb * rt * max(cc, tail)             # f32 similarity chunk
    vmem_limit = min(64 << 20,
                     max(32 << 20, 2 * in_bytes + 4 * live_s + (1 << 20)))

    qb = feat_q.reshape(B, P, D)
    kb = feat_k.reshape(B, P, D)

    kernel = functools.partial(
        _patch_nce_kernel, col_chunk=cc, n_full=n_full, tail=tail,
        bf16_matmul=bf16_matmul, bf16_exp=bf16_exp,
        assume_normalized=assume_normalized)

    partials = pl.pallas_call(
        kernel,
        out_shape=jax.ShapeDtypeStruct((B // bb, P // rt, 1, 1), jnp.float32),
        grid_spec=pltpu.PrefetchScalarGridSpec(
            num_scalar_prefetch=0,
            grid=(B // bb, P // rt),
            in_specs=[
                pl.BlockSpec((bb, rt, D), lambda b, r: (b, r, 0)),
                pl.BlockSpec((bb, P, D), lambda b, r: (b, 0, 0)),
            ],
            out_specs=pl.BlockSpec((None, None, 1, 1),
                                   lambda b, r: (b, r, 0, 0)),
        ),
        compiler_params=pltpu.CompilerParams(
            dimension_semantics=("parallel", "parallel"),
            vmem_limit_bytes=int(vmem_limit),
        ),
    )(qb, kb)

    return jnp.sum(partials) / jnp.float32(N)


def patch_nce_loss_ref(feat_q, feat_k, *, batch_size):
    """float64 numpy reference mirroring the PyTorch forward exactly."""
    q = np.asarray(feat_q, dtype=np.float64)
    k = np.asarray(feat_k, dtype=np.float64)
    N, D = q.shape
    P = N // batch_size
    l_pos = np.sum(q * k, axis=1, keepdims=True)                       # (N, 1)
    l_neg = np.einsum("bpd,bqd->bpq", q.reshape(batch_size, P, D),
                      k.reshape(batch_size, P, D))                     # (B,P,P)
    idx = np.arange(P)
    l_neg[:, idx, idx] = NEG_MASK_VALUE
    logits = np.concatenate([l_pos, l_neg.reshape(N, P)], axis=1) / NCE_T
    m = logits.max(axis=1, keepdims=True)
    lse = np.log(np.exp(logits - m).sum(axis=1, keepdims=True)) + m
    loss = lse[:, 0] - logits[:, 0]
    return float(loss.mean())


if __name__ == "__main__":
    key = jax.random.PRNGKey(0)

    # (batch, npatches, dim, kwargs, rtol, atol)
    configs = [
        # exact f32 MXU path, full-width columns, 2 batch items folded per step
        (2, 16, 32, dict(bf16_matmul=False), 1e-3, 1e-4),
        # bf16 MXU, chunked online logsumexp (2 chunks) + row tiling (2 tiles)
        (2, 256, 32, dict(col_chunk=128, row_tile=128), 2e-2, 2e-3),
        # bf16 MXU + bf16 exp, ragged P (one 256 chunk + 64 tail), static-max path
        (2, 320, 32, dict(col_chunk=256, bf16_exp=True, assume_normalized=True),
         3e-2, 1e-2),
    ]

    for batch_size, npatches, dim, kwargs, rtol, atol in configs:
        N = batch_size * npatches
        key, kq, kk = jax.random.split(key, 3)
        feat_q = jax.random.normal(kq, (N, dim), dtype=jnp.float32)
        feat_k = jax.random.normal(kk, (N, dim), dtype=jnp.float32)
        # L2-normalize, as CUT does before the NCE loss.
        feat_q = feat_q / jnp.linalg.norm(feat_q, axis=1, keepdims=True)
        feat_k = feat_k / jnp.linalg.norm(feat_k, axis=1, keepdims=True)

        fn = jax.jit(functools.partial(patch_nce_loss, batch_size=batch_size,
                                       **kwargs))
        loss = jax.block_until_ready(fn(feat_q, feat_k))
        ref = patch_nce_loss_ref(feat_q, feat_k, batch_size=batch_size)
        assert np.allclose(float(loss), ref, rtol=rtol, atol=atol), (
            batch_size, npatches, dim, kwargs, float(loss), ref)

    print("KERNEL_OK")
</pallas_src>

<mosaic_0001>
module attributes {stable_mosaic.version = 11 : i64} {
  func.func @_patch_nce_kernel(%arg0: i32, %arg1: i32, %arg2: memref<2x16x32xf32, #tpu.memory_space<vmem>>, %arg3: memref<2x16x32xf32, #tpu.memory_space<vmem>>, %arg4: memref<1x1x1x1xf32, #tpu.memory_space<vmem>>) attributes {dimension_semantics = [#tpu.dimension_semantics<parallel>, #tpu.dimension_semantics<parallel>], iteration_bounds = array<i64: 1, 1>, scalar_prefetch = 0 : i64, scratch_operands = 0 : i64, tpu.core_type = #tpu.core_type<tc>, window_params = [{transform_indices = @transform_0, window_bounds = array<i64: 2, 16, 32>}, {transform_indices = @transform_1, window_bounds = array<i64: 2, 16, 32>}, {transform_indices = @transform_2, window_bounds = array<i64: 1, 1, 1, 1>}]} {
    %c0 = arith.constant 0 : index
    %c0_0 = arith.constant 0 : index
    %c0_1 = arith.constant 0 : index
    %0 = vector.load %arg2[%c0, %c0_0, %c0_1] : memref<2x16x32xf32, #tpu.memory_space<vmem>>, vector<2x16x32xf32>
    %cst = arith.constant 14.2857141 : f32
    %1 = vector.broadcast %cst : f32 to vector<2x16x32xf32>
    %2 = arith.mulf %0, %1 : vector<2x16x32xf32>
    %c0_2 = arith.constant 0 : index
    %c0_3 = arith.constant 0 : index
    %c0_4 = arith.constant 0 : index
    %3 = vector.load %arg3[%c0_2, %c0_3, %c0_4] : memref<2x16x32xf32, #tpu.memory_space<vmem>>, vector<2x16x32xf32>
    %4 = arith.mulf %2, %3 : vector<2x16x32xf32>
    %cst_5 = arith.constant dense<0.000000e+00> : vector<2x16xf32>
    %5 = vector.multi_reduction <add>, %4, %cst_5 [2] : vector<2x16x32xf32> to vector<2x16xf32>
    %6 = vector.shape_cast %5 : vector<2x16xf32> to vector<2x16x1xf32>
    %cst_6 = arith.constant 0.000000e+00 : f32
    %7 = vector.broadcast %cst_6 : f32 to vector<2x16x1xf32>
    %c0_7 = arith.constant 0 : index
    %c0_8 = arith.constant 0 : index
    %c0_9 = arith.constant 0 : index
    %8 = vector.load %arg3[%c0_7, %c0_8, %c0_9] : memref<2x16x32xf32, #tpu.memory_space<vmem>>, vector<2x16x32xf32>
    "tpu.trace_start"() <{level = 10 : i32, message = "brd,bcd->brc"}> : () -> ()
    %cst_10 = arith.constant dense<0.000000e+00> : vector<2x16x16xf32>
    %9 = tpu.matmul %2, %8, %cst_10 {dimension_numbers = #tpu.dot_dimension_numbers<[2], [2], [1], [1], [0, 0, 0, 1, 1, 1], [0], [0]>} : vector<2x16x32xf32>, vector<2x16x32xf32>, vector<2x16x16xf32> -> vector<2x16x16xf32>
    "tpu.trace_stop"() : () -> ()
    %cst_11 = arith.constant dense<0xFF800000> : vector<2x16xf32>
    %10 = vector.multi_reduction <maximumf>, %9, %cst_11 [2] : vector<2x16x16xf32> to vector<2x16xf32>
    %11 = vector.shape_cast %10 : vector<2x16xf32> to vector<2x16x1xf32>
    %12 = arith.maximumf %6, %11 : vector<2x16x1xf32>
    %13 = arith.subf %6, %12 : vector<2x16x1xf32>
    %14 = math.exp %13 : vector<2x16x1xf32>
    %15 = arith.mulf %7, %14 : vector<2x16x1xf32>
    %16 = vector.broadcast %12 : vector<2x16x1xf32> to vector<2x16x16xf32>
    %17 = arith.subf %9, %16 : vector<2x16x16xf32>
    %18 = math.exp %17 : vector<2x16x16xf32>
    %cst_12 = arith.constant dense<0.000000e+00> : vector<2x16xf32>
    %19 = vector.multi_reduction <add>, %18, %cst_12 [2] : vector<2x16x16xf32> to vector<2x16xf32>
    %20 = vector.shape_cast %19 : vector<2x16xf32> to vector<2x16x1xf32>
    %21 = arith.addf %15, %20 : vector<2x16x1xf32>
    %cst_13 = arith.constant -142.857147 : f32
    %22 = vector.broadcast %cst_13 : f32 to vector<2x16x1xf32>
    %23 = arith.subf %22, %12 : vector<2x16x1xf32>
    %24 = math.exp %23 : vector<2x16x1xf32>
    %25 = arith.addf %21, %24 : vector<2x16x1xf32>
    %26 = math.log %25 : vector<2x16x1xf32>
    %27 = arith.addf %12, %26 : vector<2x16x1xf32>
    %28 = arith.subf %27, %6 : vector<2x16x1xf32>
    %29 = vector.shape_cast %28 : vector<2x16x1xf32> to vector<1x2x16x1xf32>
    %cst_14 = arith.constant dense<0.000000e+00> : vector<1xf32>
    %30 = vector.multi_reduction <add>, %29, %cst_14 [1, 2, 3] : vector<1x2x16x1xf32> to vector<1xf32>
    %31 = vector.shape_cast %30 : vector<1xf32> to vector<1x1x1x1xf32>
    %32 = vector.extract %31[0, 0, 0, 0] : f32 from vector<1x1x1x1xf32>
    %33 = vector.broadcast %32 : f32 to vector<1x1xf32>
    %c0_15 = arith.constant 0 : index
    %c0_16 = arith.constant 0 : index
    %c0_17 = arith.constant 0 : index
    %c0_18 = arith.constant 0 : index
    %34 = vector.load %arg4[%c0_15, %c0_16, %c0_17, %c0_18] : memref<1x1x1x1xf32, #tpu.memory_space<vmem>>, vector<1x1x1x1xf32>
    %35 = vector.shape_cast %34 : vector<1x1x1x1xf32> to vector<1x1xf32>
    %36 = vector.shape_cast %33 : vector<1x1xf32> to vector<1x1x1x1xf32>
    tpu.vector_store %arg4[%c0_15, %c0_16, %c0_17, %c0_18], %36 {strides = array<i32>} : memref<1x1x1x1xf32, #tpu.memory_space<vmem>>, vector<1x1x1x1xf32>,
    return
  }
  func.func @transform_0(%arg0: i32, %arg1: i32) -> (i32, i32, i32) {
    %c0_i32 = arith.constant 0 : i32
    %c0_i32_0 = arith.constant 0 : i32
    return %arg0, %arg1, %c0_i32 : i32, i32, i32
  }
  func.func @transform_1(%arg0: i32, %arg1: i32) -> (i32, i32, i32) {
    %c0_i32 = arith.constant 0 : i32
    %c0_i32_0 = arith.constant 0 : i32
    %c0_i32_1 = arith.constant 0 : i32
    return %arg0, %c0_i32, %c0_i32_0 : i32, i32, i32
  }
  func.func @transform_2(%arg0: i32, %arg1: i32) -> (i32, i32, i32, i32) {
    %c0_i32 = arith.constant 0 : i32
    %c0_i32_0 = arith.constant 0 : i32
    %c0_i32_1 = arith.constant 0 : i32
    return %arg0, %arg1, %c0_i32, %c0_i32_0 : i32, i32, i32, i32
  }
}

</mosaic_0001>

<bundles_post_ra>
// kernel: patch_nce_loss.1
= control target key start
LH: loop header
LB: loop body
LE: loop exit
PB: predicated region body
PF: predicated region fallthrough
CT: control target
= control target key end

     0   :  { %7 = vsyncpa [#allocation3], 0  ;;  %s655_s0 = inlined_call_operand.hbm [shape: f32[2,16,32], index: 0, kind: input, shape index: {}]   ;;  %s656_s1 = inlined_call_operand.hbm [shape: f32[2,16,32], index: 1, kind: input, shape index: {}]   ;;  %s657_s2 = inlined_call_operand.hbm [shape: f32[1,1,1,1], index: 2, kind: output, shape index: {}]  }
   0x1   :  { %8 = vsyncpa [#allocation6], 0 }
   0x2   :  { %9 = vsyncpa [#allocation4], 0  ;;  %s525_s9 = smov [#allocation2]   ;;  %s453_s13 = scalar_lea.hbm %s655_s0, 512 }
   0x3   :  { %s15_s10 = sshll.u32 %s525_s9, 4  ;;  %p454_p0 = scmp.ne.s32.totalorder %s655_s0, %s453_s13  ;;  %s16_s10 = int_to_ptr.vmem [resolvable:$true] %s15_s10 }
   0x4   :  { %p457_p1 = scmp.lt.u32.totalorder %s453_s13, %s655_s0 }
   0x6   :  { %p459_p2 = pnand %p457_p1, %p454_p0 }
   0x8   :  { %462 = shalt.err (!%p459_p2)
}
   0x9   :  { %s463_s18 = scalar_lea.vmem %s16_s10, 512  ;;  %p468_p4 = scmp.lt.s32.totalorder %s16_s10, %s16_s10 }
   0xa   :  { %p464_p3 = scmp.ne.s32.totalorder %s16_s10, %s463_s18  ;;  %p469_p5 = scmp.lt.s32.totalorder %s463_s18, %s463_s18 }
   0xc   :  { %p470_p6 = por %p469_p5, %p468_p4 }
   0xe   :  { %p471_p7 = pnand %p470_p6, %p464_p3 }
  0x10   :  { %474 = shalt.err (!%p471_p7)
}
  0x11   :  { %s526_s19 = smov 128   ;;  %s527_s20 = smov 8  }
  0x12   :  { %21 = dma.hbm_to_vmem [thread:$0]  %s655_s0, 512, %s16_s10, [#allocation3], %s526_s19, %s526_s19, %s527_s20  }
  0x13   :  { %s528_s23 = smov [#allocation5]   ;;  %s475_s27 = scalar_lea.hbm %s656_s1, 512 }
  0x14   :  { %s27_s24 = sshll.u32 %s528_s23, 4  ;;  %p476_p8 = scmp.ne.s32.totalorder %s656_s1, %s475_s27  ;;  %s28_s24 = int_to_ptr.vmem [resolvable:$true] %s27_s24 }
  0x15   :  { %p479_p9 = scmp.lt.u32.totalorder %s475_s27, %s656_s1 }
  0x17   :  { %p481_p10 = pnand %p479_p9, %p476_p8 }
  0x19   :  { %484 = shalt.err (!%p481_p10)
}
  0x1a   :  { %s485_s4 = scalar_lea.vmem %s28_s24, 512  ;;  %p490_p12 = scmp.lt.s32.totalorder %s28_s24, %s28_s24 }
  0x1b   :  { %p486_p11 = scmp.ne.s32.totalorder %s28_s24, %s485_s4  ;;  %p491_p13 = scmp.lt.s32.totalorder %s485_s4, %s485_s4 }
  0x1d   :  { %p492_p0 = por %p491_p13, %p490_p12 }
  0x1f   :  { %p493_p1 = pnand %p492_p0, %p486_p11 }
  0x21   :  { %496 = shalt.err (!%p493_p1)
}
  0x22   :  { %33 = dma.hbm_to_vmem [thread:$0]  %s656_s1, 512, %s28_s24, [#allocation6], %s526_s19, %s526_s19, %s527_s20  }
  0x23   :  { %519 = dma.done.wait [#allocation3], 512  }
  0x24   :  { %520 = vsyncadd [#allocation3], 4294966784 }
  0x25   :  { %521 = dma.done.wait [#allocation6], 512  }
  0x26   :  { %522 = vsyncadd [#allocation6], 4294966784  ;;  %vm56_vm0 = vcmask 261120   ;;  %v48_v1 = vld [vmem:[#allocation5] sm:$0xff]  ;;  %v49_v2 = vld [vmem:[#allocation5 + $0x8] sm:$0xff]  ;;  %vm243_vm2 = vcmask 130048  }
  0x27   :  { %vm571_vm1 = vmpackc.low %vm56_vm0, %vm56_vm0  ;;  %v50_v3 = vld [vmem:[#allocation5 + $0x10] sm:$0xff]  ;;  %v402_v4 = vpack.c.bf16 %v49_v2, %v48_v1  ;;  %v51_v5 = vld [vmem:[#allocation5 + $0x18] sm:$0xff]  ;;  %vm336_vm3 = vcmask 7168   ;;  %s529_s1 = smov [#allocation7]   ;;  %vm354_vm4 = vcmask 0  }
  0x28   :  { %v40_v6 = vld [vmem:[#allocation2] sm:$0xff]  ;;  %v408_v7 = vpack.c.bf16 %v51_v5, %v50_v3  ;;  %v42_v9 = vld [vmem:[#allocation2 + $0x10] sm:$0xff]  ;;  %v41_v11 = vld [vmem:[#allocation2 + $0x8] sm:$0xff]  ;;  %s362_s6 = sshll.u32 %s529_s1, 4  ;;  %s363_s6 = int_to_ptr.vmem [resolvable:$true] %s362_s6 }
  0x29   :  { %v44_v8 = vmul.f32 14.285714, %v40_v6  ;;  %404 = vmatprep.subr.msk.bf16.mxu0 %vm571_vm1, %v402_v4  ;;  %v46_v10 = vmul.f32 14.285714, %v42_v9  ;;  %v43_v13 = vld [vmem:[#allocation2 + $0x18] sm:$0xff]  ;;  %s497_s8 = scalar_lea.vmem %s363_s6, 16  ;;  %p502_p3 = scmp.lt.s32.totalorder %s363_s6, %s363_s6 }
  0x2a   :  { %407 = vmatpush3.bf16.xpose.msk.msra.mxu0 %vm571_vm1, %v402_v4  ;;  %410 = vmatprep.subr.msk.bf16.mxu1 %vm571_vm1, %v408_v7  ;;  %v45_v15 = vmul.f32 14.285714, %v41_v11  ;;  %v47_v16 = vmul.f32 14.285714, %v43_v13  ;;  %p498_p2 = scmp.ne.s32.totalorder %s363_s6, %s497_s8  ;;  %s501_s9 = scalar_lea.vmem %s363_s6, 32 }
  0x2b   :  { %v52_v12 = vmul.f32 %v48_v1, %v44_v8  ;;  %392 = vmatprep.mubr.msk.f32.mxu0 %vm56_vm0, %v44_v8  ;;  %413 = vmatpush3.bf16.xpose.msk.msra.mxu1 %vm571_vm1, %v408_v7  ;;  %v54_v19 = vmul.f32 %v50_v3, %v46_v10  ;;  %p503_p4 = scmp.lt.s32.totalorder %s501_s9, %s497_s8 }
  0x2c   :  { %399 = vmatprep.mubr.msk.f32.mxu1 %vm56_vm0, %v46_v10  ;;  %v53_v17 = vmul.f32 %v49_v2, %v45_v15  ;;  %v55_v21 = vmul.f32 %v51_v5, %v47_v16 }
  0x2d   :  { %v57_v14 = vsel %vm56_vm0, %v52_v12, 0.0  ;;  %v63_v20 = vsel %vm56_vm0, %v54_v19, 0.0  ;;  %p504_p5 = por %p503_p4, %p502_p3 }
  0x2e   :  { %58 = vadd.xlane.f32.xlu0 %v57_v14  ;;  %v60_v18 = vsel %vm56_vm0, %v53_v17, 0.0  ;;  %v66_v22 = vsel %vm56_vm0, %v55_v21, 0.0 }
  0x2f   :  { %p505_p6 = pnand %p504_p5, %p498_p2 }
  0x31   :  { %393 = vmatmul.mubr.msk.f32.vlgmr.msra.gmra.mrb[0].mxu0 %vm56_vm0, %v45_v15 }
  0x32   :  { %400 = vmatmul.mubr.msk.f32.vlgmr.msra.gmra.mrb[0].mxu1 %vm56_vm0, %v47_v16  ;;  %61 = vadd.xlane.f32.xlu0 %v60_v18 }
  0x36   :  { %64 = vadd.xlane.f32.xlu0 %v63_v20 }
  0x3a   :  { %67 = vadd.xlane.f32.xlu0 %v66_v22 }
  0xbb   :  { %v595_v31 = vpop.xlane.xlu0 %58 }
  0xbf   :  { %v597_v32 = vpop.xlane.xlu0 %61 }
  0xc3   :  { %v603_v37 = vpop.xlane.xlu0 %64 }
  0xc7   :  { %v612_v44 = vpop.xlane.xlu0 %67 }
 0x104   :  { %v394_v23 = vpop.f32.mrb[0].mxu0 }
 0x105   :  { %v147_v24 = vpop.f32.mrb[1].mxu0  ;;  %v247_v25 = vsel %vm243_vm2, %v394_v23, -inf  ;;  %v401_v26 = vpop.f32.mrb[0].mxu1 }
 0x106   :  { %248 = vmax.xlane.f32.xlu1 %v247_v25  ;;  %v234_v27 = vpop.f32.mrb[1].mxu1  ;;  %v244_v28 = vsel %vm243_vm2, %v147_v24, -inf  ;;  %v253_v30 = vsel %vm243_vm2, %v401_v26, -inf }
 0x107   :  { %v250_v29 = vsel %vm243_vm2, %v234_v27, -inf }
 0x10a   :  { %245 = vmax.xlane.f32.xlu1 %v244_v28 }
 0x10e   :  { %251 = vmax.xlane.f32.xlu1 %v250_v29 }
 0x112   :  { %254 = vmax.xlane.f32.xlu1 %v253_v30 }
 0x193   :  { %v249_v33 = vpop.xlane.xlu1 %248 }
 0x194   :  { %v600_v34 = vmax.f32 %v597_v32, %v249_v33 }
 0x196   :  { %v277_v35 = vsub.f32 %v394_v23, %v600_v34  ;;  %v261_v59 = vsub.f32 %v597_v32, %v600_v34  ;;  %v305_v62 = vsub.f32 -142.85715, %v600_v34 }
 0x197   :  { %v246_v36 = vpop.xlane.xlu1 %245 }
 0x198   :  { %v606_v38 = vmax.f32 %v595_v31, %v246_v36  ;;  %v282_v39 = vmul.f32 1.442695, %v277_v35  ;;  %v266_v61 = vmul.f32 1.442695, %v261_v59  ;;  %v310_v2 = vmul.f32 1.442695, %v305_v62 }
 0x19a   :  { %v276_v40 = vsub.f32 %v147_v24, %v606_v38  ;;  %421 = vpow2.f32 %v282_v39  ;;  %v260_v60 = vsub.f32 %v595_v31, %v606_v38  ;;  %v304_v0 = vsub.f32 -142.85715, %v606_v38 }
 0x19b   :  { %v252_v41 = vpop.xlane.xlu1 %251 }
 0x19c   :  { %v280_v42 = vmul.f32 1.442695, %v276_v40  ;;  %v610_v43 = vmax.f32 %v603_v37, %v252_v41  ;;  %v264_v63 = vmul.f32 1.442695, %v260_v60  ;;  %v308_v3 = vmul.f32 1.442695, %v304_v0 }
 0x19e   :  { %423 = vpow2.f32 %v280_v42  ;;  %v278_v45 = vsub.f32 %v234_v27, %v610_v43  ;;  %v262_v1 = vsub.f32 %v603_v37, %v610_v43  ;;  %v306_v6 = vsub.f32 -142.85715, %v610_v43 }
 0x19f   :  { %v255_v46 = vpop.xlane.xlu1 %254 }
 0x1a0   :  { %v616_v47 = vmax.f32 %v612_v44, %v255_v46  ;;  %v284_v48 = vmul.f32 1.442695, %v278_v45  ;;  %v268_v4 = vmul.f32 1.442695, %v262_v1  ;;  %v312_v9 = vmul.f32 1.442695, %v306_v6 }
 0x1a2   :  { %v279_v49 = vsub.f32 %v401_v26, %v616_v47  ;;  %425 = vpow2.f32 %v284_v48  ;;  %v263_v5 = vsub.f32 %v612_v44, %v616_v47  ;;  %v307_v10 = vsub.f32 -142.85715, %v616_v47 }
 0x1a4   :  { %v286_v50 = vmul.f32 1.442695, %v279_v49  ;;  %v422_v51 = vpop.eup %421  ;;  %v270_v7 = vmul.f32 1.442695, %v263_v5  ;;  %v314_v13 = vmul.f32 1.442695, %v307_v10 }
 0x1a5   :  { %v291_v52 = vsel %vm243_vm2, %v422_v51, 0.0 }
 0x1a6   :  { %292 = vadd.xlane.f32.xlu1 %v291_v52  ;;  %427 = vpow2.f32 %v286_v50 }
 0x1a7   :  { %429 = vpow2.f32 %v266_v61 }
 0x1a8   :  { %v424_v53 = vpop.eup %423  ;;  %431 = vpow2.f32 %v264_v63 }
 0x1a9   :  { %v288_v54 = vsel %vm243_vm2, %v424_v53, 0.0  ;;  %433 = vpow2.f32 %v310_v2 }
 0x1aa   :  { %289 = vadd.xlane.f32.xlu0 %v288_v54  ;;  %435 = vpow2.f32 %v308_v3 }
 0x1ab   :  { %437 = vpow2.f32 %v268_v4 }
 0x1ac   :  { %v426_v55 = vpop.eup %425  ;;  %439 = vpow2.f32 %v270_v7 }
 0x1ad   :  { %v294_v56 = vsel %vm243_vm2, %v426_v55, 0.0  ;;  %441 = vpow2.f32 %v312_v9 }
 0x1ae   :  { %295 = vadd.xlane.f32.xlu0 %v294_v56  ;;  %443 = vpow2.f32 %v314_v13 }
 0x1b0   :  { %v428_v57 = vpop.eup %427 }
 0x1b1   :  { %v297_v58 = vsel %vm243_vm2, %v428_v57, 0.0  ;;  %v430_v8 = vpop.eup %429 }
 0x1b2   :  { %298 = vadd.xlane.f32.xlu1 %v297_v58  ;;  %v432_v11 = vpop.eup %431  ;;  %v273_v12 = vmul.f32 0.0, %v430_v8 }
 0x1b3   :  { %v272_v16 = vmul.f32 0.0, %v432_v11  ;;  %v434_v17 = vpop.eup %433 }
 0x1b4   :  { %v436_v19 = vpop.eup %435 }
 0x1b5   :  { %v438_v22 = vpop.eup %437 }
 0x1b6   :  { %v274_v24 = vmul.f32 0.0, %v438_v22  ;;  %v440_v25 = vpop.eup %439 }
 0x1b7   :  { %v442_v28 = vpop.eup %441  ;;  %v275_v30 = vmul.f32 0.0, %v440_v25 }
 0x1b8   :  { %v444_v36 = vpop.eup %443 }
 0x233   :  { %v293_v14 = vpop.xlane.xlu1 %292 }
 0x234   :  { %v301_v15 = vadd.f32 %v293_v14, %v273_v12 }
 0x236   :  { %v317_v20 = vadd.f32 %v434_v17, %v301_v15 }
 0x237   :  { %v290_v18 = vpop.xlane.xlu0 %289 }
 0x238   :  { %v300_v21 = vadd.f32 %v290_v18, %v272_v16  ;;  %445 = vlog2.f32 %v317_v20 }
 0x23a   :  { %v316_v23 = vadd.f32 %v436_v19, %v300_v21 }
 0x23b   :  { %v296_v26 = vpop.xlane.xlu0 %295 }
 0x23c   :  { %447 = vlog2.f32 %v316_v23  ;;  %v302_v27 = vadd.f32 %v296_v26, %v274_v24 }
 0x23e   :  { %v318_v29 = vadd.f32 %v442_v28, %v302_v27 }
 0x23f   :  { %v299_v33 = vpop.xlane.xlu1 %298 }
 0x240   :  { %449 = vlog2.f32 %v318_v29  ;;  %v303_v35 = vadd.f32 %v299_v33, %v275_v30 }
 0x242   :  { %v446_v39 = vpop.eup %445  ;;  %v319_v40 = vadd.f32 %v444_v36, %v303_v35 }
 0x243   :  { %v323_v42 = vmul.f32 0.6931472, %v446_v39 }
 0x244   :  { %451 = vlog2.f32 %v319_v40 }
 0x245   :  { %v329_v48 = vadd.f32 %v323_v42, %v600_v34 }
 0x246   :  { %v448_v41 = vpop.eup %447 }
 0x247   :  { %v321_v45 = vmul.f32 0.6931472, %v448_v41  ;;  %v333_v53 = vsub.f32 %v329_v48, %v597_v32 }
 0x249   :  { %v328_v46 = vadd.f32 %v321_v45, %v606_v38  ;;  %v338_v59 = vsel %vm336_vm3, %v333_v53, 0.0 }
 0x24a   :  { %v450_v49 = vpop.eup %449 }
 0x24b   :  { %v325_v50 = vmul.f32 0.6931472, %v450_v49  ;;  %v332_v51 = vsub.f32 %v328_v46, %v595_v31 }
 0x24d   :  { %v330_v52 = vadd.f32 %v325_v50, %v610_v43  ;;  %v337_v57 = vsel %vm336_vm3, %v332_v51, 0.0 }
 0x24e   :  { %v452_v54 = vpop.eup %451  ;;  %v339_v60 = vadd.f32 %v338_v59, %v337_v57 }
 0x24f   :  { %v327_v55 = vmul.f32 0.6931472, %v452_v54  ;;  %v334_v56 = vsub.f32 %v330_v52, %v603_v37 }
 0x251   :  { %v331_v58 = vadd.f32 %v327_v55, %v616_v47  ;;  %v340_v38 = vsel %vm336_vm3, %v334_v56, 0.0 }
 0x252   :  { %v341_v61 = vadd.f32 %v340_v38, %v339_v60 }
 0x253   :  { %v335_v34 = vsub.f32 %v331_v58, %v612_v44 }
 0x255   :  { %v342_v62 = vsel %vm336_vm3, %v335_v34, 0.0 }
 0x256   :  { %v343_v31 = vadd.f32 %v342_v62, %v341_v61 }
 0x258   :  { %344 = vadd.xlane.f32.xlu0 %v343_v31 }
 0x2e5   :  { %v345_v43 = vpop.xlane.xlu0 %344 }
 0x2e6   :  { %v346_v63 = vrot.slane %v345_v43, 4 }
 0x2e8   :  { %v347_v32 = vadd.f32 %v346_v63, %v345_v43 }
 0x2ea   :  { %v348_v0 = vrot.slane %v347_v32, 2 }
 0x2ec   :  { %v349_v1 = vadd.f32 %v348_v0, %v347_v32 }
 0x2ee   :  { %v350_v2 = vrot.slane %v349_v1, 1 }
 0x2f0   :  { %v351_v3 = vadd.f32 %v350_v2, %v349_v1 }
 0x2f2   :  { %414 = vpush %v351_v3 }
 0x323   :  { %s415_s7 = spop %414 }
 0x324   :  { %v353_v37 = vstv %s415_s7 }
 0x325   :  { %355 = vst.msk [vmem:[#allocation7] sm:$0x1] %vm354_vm4, %v353_v37 }
 0x326   :  { %508 = shalt.err (!%p505_p6)
}
 0x327   :  { %s509_s12 = scalar_lea.hbm %s657_s2, 16 }
 0x328   :  { %p510_p7 = scmp.ne.s32.totalorder %s657_s2, %s509_s12  ;;  %p513_p8 = scmp.lt.u32.totalorder %s509_s12, %s657_s2 }
 0x32a   :  { %p515_p9 = pnand %p513_p8, %p510_p7 }
 0x32c   :  { %518 = shalt.err (!%p515_p9)
}
 0x32d   :  { %365 = dma.vmem_to_hbm [thread:$0]  %s363_s6, 16, %s657_s2, [#allocation4]  }
 0x32e   :  { %523 = dma.done.wait [#allocation4], 16  }
 0x32f   :  { %524 = vsyncadd [#allocation4], 4294967280 }
 0x330   :  { %369 = vsyncpa [#allocation3], 1 }
 0x331   :  { %370 = vsyncpa [#allocation6], 1 }
 0x332   :  { %371 = vsyncpa [#allocation4], 1 }

</bundles_post_ra>
